<compile_context>
chip_gen: v7x
topology: tpu7x:2x2x1
jax: 0.10.0
libtpu: 0.0.40
codegen_flags: <defaults>
</compile_context>

<pallas_src>
import functools

import jax
import jax.numpy as jnp
from jax.experimental import pallas as pl
from jax.experimental.pallas import tpu as pltpu

_LANES = 128


def _msle_kernel(x_ref, y_ref, out_ref, acc_ref, *, inv_n):
    step = pl.program_id(0)

    @pl.when(step == 0)
    def _init():
        acc_ref[...] = jnp.zeros_like(acc_ref)

    x = x_ref[...]                      # (TILE_R, 128) f32 predictions
    y = y_ref[...]                      # (TILE_R, 128) f32 targets
    d = jnp.log1p(x) - jnp.log1p(y)     # EUP log1p; numerically stable near 0
    # Per-lane partial sums (sublane reduce only); full reduce deferred to end.
    acc_ref[...] += jnp.sum(d * d, axis=0, keepdims=True)

    @pl.when(step == pl.num_programs(0) - 1)
    def _finalize():
        out_ref[...] = jnp.sum(acc_ref[...], keepdims=True) * inv_n


def msle_loss(pred, target, *, max_tile_rows: int = 512):
    """Pallas TPU mean-squared-log-error: mean((log1p(pred) - log1p(target))^2).

    pred / target: arbitrary-shaped arrays with the same number of elements
    (the torch module uses (N, 1)); values are expected to be >= 0.
    Returns a scalar float32 loss.
    """
    pred = jnp.asarray(pred, jnp.float32).reshape(-1)
    target = jnp.asarray(target, jnp.float32).reshape(-1)
    assert pred.shape == target.shape, (pred.shape, target.shape)
    n = pred.shape[0]

    # Lane-dense layout: flatten -> (rows, 128); tile over rows.
    rows = pl.cdiv(n, _LANES)
    tile_rows = min(int(max_tile_rows), ((rows + 7) // 8) * 8)  # multiple of 8
    rows_padded = pl.cdiv(rows, tile_rows) * tile_rows
    padded = rows_padded * _LANES

    pred_p = jnp.pad(pred, (0, padded - n)).reshape(rows_padded, _LANES)
    tgt_p = jnp.pad(target, (0, padded - n)).reshape(rows_padded, _LANES)

    kernel = functools.partial(_msle_kernel, inv_n=1.0 / float(n))
    grid = (rows_padded // tile_rows,)

    out = pl.pallas_call(
        kernel,
        out_shape=jax.ShapeDtypeStruct((1, 1), jnp.float32),
        grid_spec=pltpu.PrefetchScalarGridSpec(
            num_scalar_prefetch=0,
            grid=grid,
            in_specs=[
                pl.BlockSpec((tile_rows, _LANES), lambda i: (i, 0)),
                pl.BlockSpec((tile_rows, _LANES), lambda i: (i, 0)),
            ],
            out_specs=pl.BlockSpec((1, 1), lambda i: (0, 0)),
            scratch_shapes=[pltpu.VMEM((1, _LANES), jnp.float32)],
        ),
        compiler_params=pltpu.CompilerParams(
            dimension_semantics=("arbitrary",),
        ),
    )(pred_p, tgt_p)
    return out[0, 0]


def msle_loss_ref(pred, target):
    """Pure-JAX reference mirroring the PyTorch forward exactly."""
    pred = jnp.asarray(pred, jnp.float32)
    target = jnp.asarray(target, jnp.float32)
    return jnp.mean((jnp.log1p(pred) - jnp.log1p(target)) ** 2)


if __name__ == "__main__":
    key = jax.random.PRNGKey(0)
    k1, k2 = jax.random.split(key)

    # Small, module-consistent shapes (non-negative values, as the forward requires).
    shape = (2, 4, 16, 16)
    pred = jax.random.uniform(k1, shape, jnp.float32, 0.0, 5.0)
    tgt = jax.random.uniform(k2, shape, jnp.float32, 0.0, 5.0)

    loss = jax.block_until_ready(msle_loss(pred, tgt))
    ref = jax.block_until_ready(msle_loss_ref(pred, tgt))
    assert jnp.allclose(loss, ref, rtol=1e-4, atol=1e-6), (loss, ref)

    # Exercise the multi-tile accumulator path (grid > 1).
    loss_mt = jax.block_until_ready(msle_loss(pred, tgt, max_tile_rows=8))
    assert jnp.allclose(loss_mt, ref, rtol=1e-4, atol=1e-6), (loss_mt, ref)

    # Docstring example from the PyTorch module: expected tensor(0.1115).
    doc_target = jnp.array([1.0, 1.2, 0.0, 2.0], jnp.float32).reshape(-1, 1)
    doc_input = jnp.array([0.6, 0.7, 0.3, 0.8], jnp.float32).reshape(-1, 1)
    doc_loss = jax.block_until_ready(msle_loss(doc_input, doc_target))
    assert abs(float(doc_loss) - 0.1115) < 2e-3, float(doc_loss)

    print("KERNEL_OK")
</pallas_src>

<mosaic_0001>
module attributes {stable_mosaic.version = 11 : i64} {
  func.func @_msle_kernel(%arg0: i32, %arg1: memref<16x128xf32, #tpu.memory_space<vmem>>, %arg2: memref<16x128xf32, #tpu.memory_space<vmem>>, %arg3: memref<1x1xf32, #tpu.memory_space<vmem>>, %arg4: memref<1x128xf32, #tpu.memory_space<vmem>>) attributes {dimension_semantics = [#tpu.dimension_semantics<arbitrary>], iteration_bounds = array<i64: 1>, scalar_prefetch = 0 : i64, scratch_operands = 1 : i64, tpu.core_type = #tpu.core_type<tc>, window_params = [{transform_indices = @transform_0, window_bounds = array<i64: 16, 128>}, {transform_indices = @transform_1, window_bounds = array<i64: 16, 128>}, {pipeline_mode = #tpu.pipeline_mode<synchronous>, transform_indices = @transform_2, window_bounds = array<i64: 1, 1>}]} {
    %c0_i32 = arith.constant 0 : i32
    %0 = arith.cmpi eq, %arg0, %c0_i32 : i32
    %1 = arith.extui %0 : i1 to i32
    %c0_i32_0 = arith.constant 0 : i32
    %2 = arith.cmpi ne, %1, %c0_i32_0 : i32
    scf.if %2 {
      %cst_10 = arith.constant 0.000000e+00 : f32
      %17 = vector.broadcast %cst_10 : f32 to vector<1x128xf32>
      %c0_11 = arith.constant 0 : index
      %c0_12 = arith.constant 0 : index
      %18 = vector.load %arg4[%c0_11, %c0_12] : memref<1x128xf32, #tpu.memory_space<vmem>>, vector<1x128xf32>
      tpu.vector_store %arg4[%c0_11, %c0_12], %17 {strides = array<i32>} : memref<1x128xf32, #tpu.memory_space<vmem>>, vector<1x128xf32>,
    } else {
    }
    %c0 = arith.constant 0 : index
    %c0_1 = arith.constant 0 : index
    %3 = vector.load %arg1[%c0, %c0_1] : memref<16x128xf32, #tpu.memory_space<vmem>>, vector<16x128xf32>
    %c0_2 = arith.constant 0 : index
    %c0_3 = arith.constant 0 : index
    %4 = vector.load %arg2[%c0_2, %c0_3] : memref<16x128xf32, #tpu.memory_space<vmem>>, vector<16x128xf32>
    %5 = math.log1p %3 : vector<16x128xf32>
    %6 = math.log1p %4 : vector<16x128xf32>
    %7 = arith.subf %5, %6 : vector<16x128xf32>
    %c0_4 = arith.constant 0 : index
    %c0_5 = arith.constant 0 : index
    %8 = vector.load %arg4[%c0_4, %c0_5] : memref<1x128xf32, #tpu.memory_space<vmem>>, vector<1x128xf32>
    %9 = arith.mulf %7, %7 : vector<16x128xf32>
    %cst = arith.constant dense<0.000000e+00> : vector<128xf32>
    %10 = vector.multi_reduction <add>, %9, %cst [0] : vector<16x128xf32> to vector<128xf32>
    %11 = vector.shape_cast %10 : vector<128xf32> to vector<1x128xf32>
    %12 = arith.addf %8, %11 : vector<1x128xf32>
    %c0_6 = arith.constant 0 : index
    %c0_7 = arith.constant 0 : index
    %13 = vector.load %arg4[%c0_6, %c0_7] : memref<1x128xf32, #tpu.memory_space<vmem>>, vector<1x128xf32>
    tpu.vector_store %arg4[%c0_6, %c0_7], %12 {strides = array<i32>} : memref<1x128xf32, #tpu.memory_space<vmem>>, vector<1x128xf32>,
    %c0_i32_8 = arith.constant 0 : i32
    %14 = arith.cmpi eq, %arg0, %c0_i32_8 : i32
    %15 = arith.extui %14 : i1 to i32
    %c0_i32_9 = arith.constant 0 : i32
    %16 = arith.cmpi ne, %15, %c0_i32_9 : i32
    scf.if %16 {
      %c0_10 = arith.constant 0 : index
      %c0_11 = arith.constant 0 : index
      %17 = vector.load %arg4[%c0_10, %c0_11] : memref<1x128xf32, #tpu.memory_space<vmem>>, vector<1x128xf32>
      %18 = vector.shape_cast %17 : vector<1x128xf32> to vector<1x1x128xf32>
      %cst_12 = arith.constant dense<0.000000e+00> : vector<1xf32>
      %19 = vector.multi_reduction <add>, %18, %cst_12 [1, 2] : vector<1x1x128xf32> to vector<1xf32>
      %20 = vector.shape_cast %19 : vector<1xf32> to vector<1x1x1xf32>
      %21 = vector.extract %20[0, 0, 0] : f32 from vector<1x1x1xf32>
      %22 = vector.broadcast %21 : f32 to vector<1x1xf32>
      %cst_13 = arith.constant 4.8828125E-4 : f32
      %23 = vector.broadcast %cst_13 : f32 to vector<1x1xf32>
      %24 = arith.mulf %22, %23 : vector<1x1xf32>
      %c0_14 = arith.constant 0 : index
      %c0_15 = arith.constant 0 : index
      %25 = vector.load %arg3[%c0_14, %c0_15] : memref<1x1xf32, #tpu.memory_space<vmem>>, vector<1x1xf32>
      tpu.vector_store %arg3[%c0_14, %c0_15], %24 {strides = array<i32>} : memref<1x1xf32, #tpu.memory_space<vmem>>, vector<1x1xf32>,
    } else {
    }
    return
  }
  func.func @transform_0(%arg0: i32) -> (i32, i32) {
    %c0_i32 = arith.constant 0 : i32
    %c0_i32_0 = arith.constant 0 : i32
    return %arg0, %c0_i32 : i32, i32
  }
  func.func @transform_1(%arg0: i32) -> (i32, i32) {
    %c0_i32 = arith.constant 0 : i32
    %c0_i32_0 = arith.constant 0 : i32
    return %arg0, %c0_i32 : i32, i32
  }
  func.func @transform_2(%arg0: i32) -> (i32, i32) {
    %c0_i32 = arith.constant 0 : i32
    %c0_i32_0 = arith.constant 0 : i32
    %c0_i32_1 = arith.constant 0 : i32
    return %c0_i32, %c0_i32_0 : i32, i32
  }
}

</mosaic_0001>

<bundles_post_ra>
// kernel: tpu_custom_call.1
= control target key start
LH: loop header
LB: loop body
LE: loop exit
PB: predicated region body
PF: predicated region fallthrough
CT: control target
= control target key end

     0   :  { %7 = vsyncpa [#allocation4], 0  ;;  %s285_s0 = inlined_call_operand.hbm [shape: f32[16,128], index: 0, kind: input, shape index: {}]   ;;  %s286_s1 = inlined_call_operand.hbm [shape: f32[16,128], index: 1, kind: input, shape index: {}]   ;;  %s287_s2 = inlined_call_operand.hbm [shape: f32[1,1], index: 2, kind: output, shape index: {}]  }
   0x1   :  { %8 = vsyncpa [#allocation7], 0 }
   0x2   :  { %9 = vsyncpa [#allocation5], 0  ;;  %s222_s9 = smov [#allocation3]   ;;  %s150_s13 = scalar_lea.hbm %s285_s0, 256 }
   0x3   :  { %s15_s10 = sshll.u32 %s222_s9, 4  ;;  %p151_p0 = scmp.ne.s32.totalorder %s285_s0, %s150_s13  ;;  %s16_s10 = int_to_ptr.vmem [resolvable:$true] %s15_s10 }
   0x4   :  { %p154_p1 = scmp.lt.u32.totalorder %s150_s13, %s285_s0 }
   0x6   :  { %p156_p2 = pnand %p154_p1, %p151_p0 }
   0x8   :  { %159 = shalt.err (!%p156_p2)
}
   0x9   :  { %s160_s18 = scalar_lea.vmem %s16_s10, 256  ;;  %p165_p4 = scmp.lt.s32.totalorder %s16_s10, %s16_s10 }
   0xa   :  { %p161_p3 = scmp.ne.s32.totalorder %s16_s10, %s160_s18  ;;  %p166_p5 = scmp.lt.s32.totalorder %s160_s18, %s160_s18 }
   0xc   :  { %p167_p6 = por %p166_p5, %p165_p4 }
   0xe   :  { %p168_p7 = pnand %p167_p6, %p161_p3 }
  0x10   :  { %171 = shalt.err (!%p168_p7)
}
  0x11   :  { %s223_s19 = smov 128   ;;  %s224_s20 = smov 8  }
  0x12   :  { %21 = dma.hbm_to_vmem [thread:$0]  %s285_s0, 256, %s16_s10, [#allocation4], %s223_s19, %s223_s19, %s224_s20  }
  0x13   :  { %s225_s23 = smov [#allocation6]   ;;  %s172_s27 = scalar_lea.hbm %s286_s1, 256 }
  0x14   :  { %s27_s24 = sshll.u32 %s225_s23, 4  ;;  %p173_p8 = scmp.ne.s32.totalorder %s286_s1, %s172_s27  ;;  %s28_s24 = int_to_ptr.vmem [resolvable:$true] %s27_s24 }
  0x15   :  { %p176_p9 = scmp.lt.u32.totalorder %s172_s27, %s286_s1 }
  0x17   :  { %p178_p10 = pnand %p176_p9, %p173_p8 }
  0x19   :  { %181 = shalt.err (!%p178_p10)
}
  0x1a   :  { %s182_s4 = scalar_lea.vmem %s28_s24, 256  ;;  %p187_p12 = scmp.lt.s32.totalorder %s28_s24, %s28_s24 }
  0x1b   :  { %p183_p11 = scmp.ne.s32.totalorder %s28_s24, %s182_s4  ;;  %p188_p13 = scmp.lt.s32.totalorder %s182_s4, %s182_s4 }
  0x1d   :  { %p189_p0 = por %p188_p13, %p187_p12 }
  0x1f   :  { %p190_p1 = pnand %p189_p0, %p183_p11 }
  0x21   :  { %193 = shalt.err (!%p190_p1)
}
  0x22   :  { %33 = dma.hbm_to_vmem [thread:$0]  %s286_s1, 256, %s28_s24, [#allocation7], %s223_s19, %s223_s19, %s224_s20  }
  0x23   :  { %216 = dma.done.wait [#allocation4], 256  }
  0x24   :  { %217 = vsyncadd [#allocation4], 4294967040 }
  0x25   :  { %218 = dma.done.wait [#allocation7], 256  }
  0x26   :  { %219 = vsyncadd [#allocation7], 4294967040  ;;  %v226_v0 = vmov 0.0   ;;  %v45_v1 = vld [vmem:[#allocation3] sm:$0xff]  ;;  %v46_v2 = vld [vmem:[#allocation3 + $0x8] sm:$0xff]  ;;  %vm103_vm4 = vcmask 1040384  }
  0x27   :  { %44 = vst [vmem:[#allocation2] sm:$0x1] %v226_v0  ;;  %v47_v3 = vld [vmem:[#allocation6] sm:$0xff]  ;;  %v49_v4 = vadd.f32 1.0, %v45_v1  ;;  %v58_v5 = vadd.f32 1.0, %v46_v2  ;;  %v48_v6 = vld [vmem:[#allocation6 + $0x8] sm:$0xff] }
  0x28   :  { %v67_v7 = vadd.f32 1.0, %v47_v3  ;;  %v52_v8 = vmul.f32 -0.5, %v45_v1  ;;  %v76_v9 = vadd.f32 1.0, %v48_v6  ;;  %v61_v10 = vmul.f32 -0.5, %v46_v2  ;;  %s227_s1 = smov [#allocation8]  }
  0x29   :  { %142 = vlog2.f32 %v49_v4  ;;  %v70_v11 = vmul.f32 -0.5, %v47_v3  ;;  %v79_v13 = vmul.f32 -0.5, %v48_v6  ;;  %v55_v14 = vand.u32 2147483647, %v45_v1  ;;  %s124_s6 = sshll.u32 %s227_s1, 4  ;;  %s125_s6 = int_to_ptr.vmem [resolvable:$true] %s124_s6 }
  0x2a   :  { %144 = vlog2.f32 %v58_v5  ;;  %v53_v12 = vadd.f32 1.0, %v52_v8  ;;  %v62_v15 = vadd.f32 1.0, %v61_v10  ;;  %v64_v17 = vand.u32 2147483647, %v46_v2  ;;  %s194_s8 = scalar_lea.vmem %s125_s6, 16  ;;  %s198_s9 = scalar_lea.vmem %s125_s6, 32 }
  0x2b   :  { %146 = vlog2.f32 %v67_v7  ;;  %v71_v16 = vadd.f32 1.0, %v70_v11  ;;  %v73_v18 = vand.u32 2147483647, %v47_v3  ;;  %v80_v20 = vadd.f32 1.0, %v79_v13  ;;  %p195_p2 = scmp.ne.s32.totalorder %s125_s6, %s194_s8  ;;  %p199_p3 = scmp.lt.s32.totalorder %s125_s6, %s125_s6 }
  0x2c   :  { %148 = vlog2.f32 %v76_v9  ;;  %v54_v19 = vmul.f32 %v53_v12, %v45_v1  ;;  %vm267_vm0 = vcmp.lt.f32.partialorder %v55_v14, 0.0004427343  ;;  %v82_v23 = vand.u32 2147483647, %v48_v6  ;;  %p200_p4 = scmp.lt.s32.totalorder %s198_s9, %s194_s8 }
  0x2d   :  { %v63_v26 = vmul.f32 %v62_v15, %v46_v2  ;;  %v72_v27 = vmul.f32 %v71_v16, %v47_v3  ;;  %vm65_vm1 = vcmp.lt.f32.partialorder %v64_v17, 0.0004427343  ;;  %vm74_vm2 = vcmp.lt.f32.partialorder %v73_v18, 0.0004427343 }
  0x2e   :  { %v81_v32 = vmul.f32 %v80_v20, %v48_v6  ;;  %vm83_vm3 = vcmp.lt.f32.partialorder %v82_v23, 0.0004427343  ;;  %v87_v48 = vld [vmem:[#allocation2] sm:$0x1]  ;;  %vm116_vm5 = vcmask 0   ;;  %p201_p5 = por %p200_p4, %p199_p3 }
  0x30   :  { %p202_p6 = pnand %p201_p5, %p195_p2 }
  0x33   :  { %v143_v21 = vpop.eup %142 }
  0x34   :  { %v145_v24 = vpop.eup %144  ;;  %v51_v25 = vmul.f32 0.6931472, %v143_v21 }
  0x35   :  { %v147_v28 = vpop.eup %146  ;;  %v60_v29 = vmul.f32 0.6931472, %v145_v24 }
  0x36   :  { %v57_v30 = vsel %vm267_vm0, %v54_v19, %v51_v25  ;;  %v69_v31 = vmul.f32 0.6931472, %v147_v28  ;;  %v149_v33 = vpop.eup %148 }
  0x37   :  { %v66_v34 = vsel %vm65_vm1, %v63_v26, %v60_v29  ;;  %v78_v36 = vmul.f32 0.6931472, %v149_v33 }
  0x38   :  { %v75_v35 = vsel %vm74_vm2, %v72_v27, %v69_v31 }
  0x39   :  { %v85_v37 = vsub.f32 %v57_v30, %v75_v35  ;;  %v84_v38 = vsel %vm83_vm3, %v81_v32, %v78_v36 }
  0x3a   :  { %v86_v39 = vsub.f32 %v66_v34, %v84_v38 }
  0x3b   :  { %v88_v40 = vmul.f32 %v85_v37, %v85_v37 }
  0x3c   :  { %v89_v41 = vmul.f32 %v86_v39, %v86_v39 }
  0x3e   :  { %v90_v42 = vadd.f32 %v89_v41, %v88_v40 }
  0x40   :  { %v91_v43 = vrot.slane %v90_v42, 4 }
  0x42   :  { %v92_v44 = vadd.f32 %v91_v43, %v90_v42 }
  0x44   :  { %v93_v45 = vrot.slane %v92_v44, 2 }
  0x46   :  { %v94_v46 = vadd.f32 %v93_v45, %v92_v44 }
  0x48   :  { %v95_v47 = vrot.slane %v94_v46, 1 }
  0x4a   :  { %v96_v49 = vadd.f32 %v95_v47, %v94_v46 }
  0x4c   :  { %v97_v50 = vadd.f32 %v96_v49, %v87_v48 }
  0x4e   :  { %98 = vst [vmem:[#allocation2] sm:$0x1] %v97_v50 }
  0x55   :  { %v102_v51 = vld [vmem:[#allocation2] sm:$0x1] }
  0x56   :  { %v104_v52 = vsel %vm103_vm4, %v102_v51, 0.0 }
  0x57   :  { %105 = vadd.xlane.f32.xlu0 %v104_v52 }
  0xe4   :  { %v106_v53 = vpop.xlane.xlu0 %105 }
  0xe5   :  { %v107_v54 = vrot.slane %v106_v53, 4 }
  0xe7   :  { %v108_v55 = vadd.f32 %v107_v54, %v106_v53 }
  0xe9   :  { %v109_v56 = vrot.slane %v108_v55, 2 }
  0xeb   :  { %v110_v57 = vadd.f32 %v109_v56, %v108_v55 }
  0xed   :  { %v111_v58 = vrot.slane %v110_v57, 1 }
  0xef   :  { %v112_v59 = vadd.f32 %v111_v58, %v110_v57 }
  0xf1   :  { %134 = vpush %v112_v59 }
 0x122   :  { %s135_s7 = spop %134 }
 0x123   :  { %v114_v60 = vstv %s135_s7 }
 0x124   :  { %v115_v61 = vmul.f32 0.00048828125, %v114_v60 }
 0x126   :  { %117 = vst.msk [vmem:[#allocation8] sm:$0x1] %vm116_vm5, %v115_v61 }
 0x127   :  { %205 = shalt.err (!%p202_p6)
}
 0x128   :  { %s206_s12 = scalar_lea.hbm %s287_s2, 16 }
 0x129   :  { %p207_p7 = scmp.ne.s32.totalorder %s287_s2, %s206_s12  ;;  %p210_p8 = scmp.lt.u32.totalorder %s206_s12, %s287_s2 }
 0x12b   :  { %p212_p9 = pnand %p210_p8, %p207_p7 }
 0x12d   :  { %215 = shalt.err (!%p212_p9)
}
 0x12e   :  { %127 = dma.vmem_to_hbm [thread:$0]  %s125_s6, 16, %s287_s2, [#allocation5]  }
 0x12f   :  { %220 = dma.done.wait [#allocation5], 16  }
 0x130   :  { %221 = vsyncadd [#allocation5], 4294967280 }
 0x131   :  { %131 = vsyncpa [#allocation4], 1 }
 0x132   :  { %132 = vsyncpa [#allocation7], 1 }
 0x133   :  { %133 = vsyncpa [#allocation5], 1 }

</bundles_post_ra>
